<compile_context>
chip_gen: v7x
topology: tpu7x:2x2x1
jax: 0.10.0
libtpu: 0.0.40
codegen_flags: <defaults>
</compile_context>

<pallas_src>
import jax
import jax.numpy as jnp
from jax.experimental import pallas as pl
from jax.experimental.pallas import tpu as pltpu


_LANE = 128
# ~2 MiB blocks: (in + out) x double-buffer = ~8 MiB, fits every generation's
# default scoped VMEM with headroom while sitting on the mem-bound roofline.
_TARGET_BLOCK_BYTES = 2 * 1024 * 1024


def _scale_kernel(scale_ref, x_ref, o_ref):
    # scale_ref: SMEM f32 scalar (1,); x_ref/o_ref: VMEM (TR, C) tiles.
    o_ref[...] = (x_ref[...] * scale_ref[0]).astype(o_ref.dtype)


def _sublane(dtype):
    # dtype-aware second-to-last-dim packing (f32:8, bf16:16, int8/fp8:32)
    return {1: 32, 2: 16, 4: 8}.get(jnp.dtype(dtype).itemsize, 8)


def _choose_cols(n, max_cols=4096):
    """Largest multiple of 128 that divides n (capped at max_cols)."""
    best = None
    c = _LANE
    while c <= max_cols and c <= n:
        if n % c == 0:
            best = c
        c += _LANE
    return best


def _scale_2d(x2d, scale_f32):
    """Elementwise scale of a lane-dense (R, C) slab by an f32 SMEM scalar."""
    R, C = x2d.shape
    itemsize = jnp.dtype(x2d.dtype).itemsize
    sub = _sublane(x2d.dtype)

    tr = max(1, _TARGET_BLOCK_BYTES // (C * itemsize))
    if tr >= R:
        tr = R                                  # one block covers all rows
    else:
        tr = max(sub, (tr // sub) * sub)        # keep row tile packing-friendly
        tr = min(tr, R)

    grid = (pl.cdiv(R, tr),)
    return pl.pallas_call(
        _scale_kernel,
        out_shape=jax.ShapeDtypeStruct((R, C), x2d.dtype),
        grid=grid,
        in_specs=[
            pl.BlockSpec(memory_space=pltpu.SMEM),     # scale scalar, untiled
            pl.BlockSpec((tr, C), lambda i: (i, 0)),   # pipelined row tiles
        ],
        out_specs=pl.BlockSpec((tr, C), lambda i: (i, 0)),
        input_output_aliases={1: 0},                   # scale in place
        compiler_params=pltpu.CompilerParams(
            dimension_semantics=("parallel",)),        # shard rows across TCs (v7x)
    )(scale_f32, x2d)


def random_scaled(signal, key, scale=0.2, p=1.0):
    """JAX/Pallas equivalent of RandomScaled.forward.

    signal: NCHW float array.
    key:    PRNG key controlling the dice roll and the scale factor.
    """
    lo, hi = 1.0 - scale, 1.0 + scale
    k_dice, k_scale = jax.random.split(key)
    factor = jax.random.uniform(k_scale, (), dtype=jnp.float32,
                                minval=lo, maxval=hi)
    factor_smem = factor.reshape((1,))  # kept in f32 for the SMEM scalar path

    orig_shape = signal.shape
    flat = signal.reshape(-1)
    n = flat.shape[0]

    def _apply(sig_flat):
        n_main = (n // _LANE) * _LANE
        if n_main == 0:
            # TODO(synk): tensors smaller than one lane go through plain XLA.
            return (sig_flat * factor).astype(sig_flat.dtype)
        cols = _choose_cols(n_main)
        main = sig_flat[:n_main].reshape(-1, cols)
        y_main = _scale_2d(main, factor_smem).reshape(-1)
        if n_main == n:
            return y_main
        # <128-element remainder: cheap plain multiply, avoids any pad copy.
        tail = (sig_flat[n_main:] * factor).astype(sig_flat.dtype)
        return jnp.concatenate([y_main, tail])

    if p >= 1.0:
        out_flat = _apply(flat)
    elif p <= 0.0:
        out_flat = flat
    else:
        dice = jax.random.uniform(k_dice, ()) < p  # TakeDice(p)
        # Skip the whole HBM pass on the identity branch.
        out_flat = jax.lax.cond(dice, _apply, lambda s: s, flat)

    return out_flat.reshape(orig_shape)


if __name__ == "__main__":
    key = jax.random.PRNGKey(0)
    k_x, k_aug = jax.random.split(key)

    # Small NCHW input: batch=2, channels=4, spatial=16
    x = jax.random.normal(k_x, (2, 4, 16, 16), dtype=jnp.float32)

    out = random_scaled(x, k_aug, scale=0.2, p=1.0)
    out = jax.block_until_ready(out)

    # Reference check: same scalar draw path in plain JAX.
    lo, hi = 0.8, 1.2
    kd, ks = jax.random.split(k_aug)
    factor = jax.random.uniform(ks, (), dtype=jnp.float32, minval=lo, maxval=hi)
    ref = x * factor
    assert out.shape == x.shape and out.dtype == x.dtype
    assert jnp.allclose(out, ref, atol=1e-6, rtol=1e-6)

    print("KERNEL_OK")
</pallas_src>

<mosaic_0001>
module attributes {stable_mosaic.version = 11 : i64} {
  func.func @_scale_kernel(%arg0: i32, %arg1: memref<1xf32, #tpu.memory_space<smem>>, %arg2: memref<1x2048xf32, #tpu.memory_space<vmem>>, %arg3: memref<1x2048xf32, #tpu.memory_space<vmem>>) attributes {dimension_semantics = [#tpu.dimension_semantics<parallel>], iteration_bounds = array<i64: 1>, scalar_prefetch = 0 : i64, scratch_operands = 0 : i64, tpu.core_type = #tpu.core_type<tc>, window_params = [{transform_indices = @transform_0, window_bounds = array<i64: 1>}, {transform_indices = @transform_1, window_bounds = array<i64: 1, 2048>}, {transform_indices = @transform_2, window_bounds = array<i64: 1, 2048>}]} {
    %c0 = arith.constant 0 : index
    %c0_0 = arith.constant 0 : index
    %0 = vector.load %arg2[%c0, %c0_0] : memref<1x2048xf32, #tpu.memory_space<vmem>>, vector<1x2048xf32>
    %c0_1 = arith.constant 0 : index
    %1 = memref.load %arg1[%c0_1] : memref<1xf32, #tpu.memory_space<smem>>
    %2 = vector.broadcast %1 : f32 to vector<1x2048xf32>
    %3 = arith.mulf %0, %2 : vector<1x2048xf32>
    %c0_2 = arith.constant 0 : index
    %c0_3 = arith.constant 0 : index
    %4 = vector.load %arg3[%c0_2, %c0_3] : memref<1x2048xf32, #tpu.memory_space<vmem>>, vector<1x2048xf32>
    tpu.vector_store %arg3[%c0_2, %c0_3], %3 {strides = array<i32>} : memref<1x2048xf32, #tpu.memory_space<vmem>>, vector<1x2048xf32>,
    return
  }
  func.func @transform_0(%arg0: i32) -> i32 {
    %c0_i32 = arith.constant 0 : i32
    %c0_i32_0 = arith.constant 0 : i32
    return %c0_i32 : i32
  }
  func.func @transform_1(%arg0: i32) -> (i32, i32) {
    %c0_i32 = arith.constant 0 : i32
    %c0_i32_0 = arith.constant 0 : i32
    return %arg0, %c0_i32 : i32, i32
  }
  func.func @transform_2(%arg0: i32) -> (i32, i32) {
    %c0_i32 = arith.constant 0 : i32
    %c0_i32_0 = arith.constant 0 : i32
    return %arg0, %c0_i32 : i32, i32
  }
}

</mosaic_0001>

<bundles_post_ra>
// kernel: tpu_custom_call.1
= control target key start
LH: loop header
LB: loop body
LE: loop exit
PB: predicated region body
PF: predicated region fallthrough
CT: control target
= control target key end

     0   :  { %8 = vsyncpa [#allocation4], 0  ;;  %s142_s0 = inlined_call_operand.<no memory space> [shape: f32[1], index: 0, kind: input, shape index: {}]   ;;  %s143_s1 = inlined_call_operand.hbm [shape: f32[1,2048], index: 1, kind: input, shape index: {}, may-alias: {1,2}]   ;;  %s144_s2 = inlined_call_operand.hbm [shape: f32[1,2048], index: 2, kind: output, shape index: {}, may-alias: {1,2}]  }
   0x1   :  { %9 = vsyncpa [#allocation5], 0  ;;  %s98_s9 = smov [#allocation3]   ;;  %s50_s13 = scalar_lea.hbm %s143_s1, 256 }
   0x2   :  { %s18_s10 = sshll.u32 %s98_s9, 4  ;;  %p51_p0 = scmp.ne.s32.totalorder %s143_s1, %s50_s13  ;;  %s19_s10 = int_to_ptr.vmem [resolvable:$true] %s18_s10 }
   0x3   :  { %p54_p1 = scmp.lt.u32.totalorder %s50_s13, %s143_s1 }
   0x5   :  { %p56_p2 = pnand %p54_p1, %p51_p0 }
   0x7   :  { %59 = shalt.err (!%p56_p2)
}
   0x8   :  { %s60_s18 = scalar_lea.vmem %s19_s10, 256  ;;  %p65_p4 = scmp.lt.s32.totalorder %s19_s10, %s19_s10 }
   0x9   :  { %p61_p3 = scmp.ne.s32.totalorder %s19_s10, %s60_s18  ;;  %p66_p5 = scmp.lt.s32.totalorder %s60_s18, %s60_s18 }
   0xb   :  { %p67_p6 = por %p66_p5, %p65_p4 }
   0xd   :  { %p68_p7 = pnand %p67_p6, %p61_p3 }
   0xf   :  { %71 = shalt.err (!%p68_p7)
}
  0x10   :  { %21 = dma.hbm_to_vmem [thread:$0]  %s143_s1, 256, %s19_s10, [#allocation4]  }
  0x11   :  { %94 = dma.done.wait [#allocation4], 256  }
  0x12   :  { %95 = vsyncadd [#allocation4], 4294967040  ;;  %v28_v0 = vstv %s142_s0  ;;  %s99_s23 = smov [#allocation6]   ;;  %v25_v1 = vld [vmem:[#allocation3] sm:$0xff]  ;;  %v26_v2 = vld [vmem:[#allocation3 + $0x8] sm:$0xff] }
  0x13   :  { %s39_s24 = sshll.u32 %s99_s23, 4  ;;  %v29_v3 = vmul.f32 %v28_v0, %v25_v1  ;;  %v30_v4 = vmul.f32 %v28_v0, %v26_v2  ;;  %s40_s24 = int_to_ptr.vmem [resolvable:$true] %s39_s24 }
  0x14   :  { %s72_s25 = scalar_lea.vmem %s40_s24, 256  ;;  %p77_p9 = scmp.lt.s32.totalorder %s40_s24, %s40_s24 }
  0x15   :  { %31 = vst [vmem:[#allocation6] sm:$0xff] %v29_v3  ;;  %32 = vst [vmem:[#allocation6 + $0x8] sm:$0xff] %v30_v4  ;;  %p73_p8 = scmp.ne.s32.totalorder %s40_s24, %s72_s25  ;;  %p78_p10 = scmp.lt.s32.totalorder %s72_s25, %s72_s25 }
  0x17   :  { %p79_p11 = por %p78_p10, %p77_p9 }
  0x19   :  { %p80_p12 = pnand %p79_p11, %p73_p8 }
  0x1b   :  { %83 = shalt.err (!%p80_p12)
}
  0x1c   :  { %s84_s0 = scalar_lea.hbm %s144_s2, 256 }
  0x1d   :  { %p85_p13 = scmp.ne.s32.totalorder %s144_s2, %s84_s0  ;;  %p88_p0 = scmp.lt.u32.totalorder %s84_s0, %s144_s2 }
  0x1f   :  { %p90_p1 = pnand %p88_p0, %p85_p13 }
  0x21   :  { %93 = shalt.err (!%p90_p1)
}
  0x22   :  { %42 = dma.vmem_to_hbm [thread:$0]  %s40_s24, 256, %s144_s2, [#allocation5]  }
  0x23   :  { %96 = dma.done.wait [#allocation5], 256  }
  0x24   :  { %97 = vsyncadd [#allocation5], 4294967040 }
  0x25   :  { %46 = vsyncpa [#allocation4], 1 }
  0x26   :  { %47 = vsyncpa [#allocation5], 1 }

</bundles_post_ra>
